<compile_context>
chip_gen: v5e
topology: v5e:2x2
jax: 0.10.0
libtpu: 0.0.40
codegen_flags: <defaults>
</compile_context>

<pallas_src>
import math

import jax
import jax.numpy as jnp
from jax import lax
from jax.experimental import pallas as pl
from jax.experimental.pallas import tpu as pltpu


# ----------------------------- Pallas kernel --------------------------------

def _banded_conv3x3(x, w_ref, n_img, h):
    """3x3 same-pad conv of stacked image row-slabs via 3 banded MXU matmuls.

    x:      (n_img*h, W*Cin) bf16 — n_img images stacked along rows.
    w_ref:  (3, W*Cin, W*Cout) bf16 banded weights (one band per kernel row
            dh); width boundary taps are already zero inside the band.
    Height boundaries are handled with block-diagonal 0/1 shift matrices on
    the MXU: x_dn[r] = x[r-1] (zero at each image's first row), x_up[r] =
    x[r+1] (zero at each image's last row).  The shift matmul result is exact
    (each output row is a single bf16 value or 0), so casting back to bf16 is
    lossless.  Cost ~ 2*(n_img*h)^2*K MACs — a few % of the main matmuls for
    the Bt values used here.
    """
    r = n_img * h
    ii = lax.broadcasted_iota(jnp.int32, (r, r), 0)
    jj = lax.broadcasted_iota(jnp.int32, (r, r), 1)
    dn = jnp.where((jj == ii - 1) & (ii % h != 0), 1.0, 0.0).astype(jnp.bfloat16)
    up = jnp.where((jj == ii + 1) & (ii % h != h - 1), 1.0, 0.0).astype(jnp.bfloat16)

    x_dn = jnp.dot(dn, x, preferred_element_type=jnp.float32).astype(jnp.bfloat16)
    x_up = jnp.dot(up, x, preferred_element_type=jnp.float32).astype(jnp.bfloat16)

    # 3 MXU pushes with stacked M = n_img*h, lane-dense N = W*Cout, f32 acc.
    acc = jnp.dot(x_dn, w_ref[0], preferred_element_type=jnp.float32)
    acc += jnp.dot(x, w_ref[1], preferred_element_type=jnp.float32)
    acc += jnp.dot(x_up, w_ref[2], preferred_element_type=jnp.float32)
    return acc


def _maxpool2x2(acc):
    """2x2 maxpool of conv rows whose columns are in (w_parity, wo, cout) order.

    acc: (R, 2*half) f32 with R a multiple of 2*per-image-rows (pairs never
    cross image boundaries).  Rows: adjacent-row max via an (R/2, 2, N) split
    (sublane select).  Columns: even/odd output pixels live in the two lane
    halves, so the width pool is a lane-aligned half-split max; the result's
    lane order is the standard (w, c) flatten expected by the next stage.
    """
    r, n = acc.shape
    half = n // 2
    a = acc.reshape(r // 2, 2, n)
    rowmax = jnp.maximum(a[:, 0, :], a[:, 1, :])          # (r//2, n)
    return jnp.maximum(rowmax[:, :half], rowmax[:, half:])  # (r//2, half)


def _vgg_fused_kernel(x_ref, w1_ref, b1_ref, w2_ref, b2_ref, o_ref):
    """Fused [conv3x3+bias+ReLU+pool] x2 for a block of Bt images.

    x_ref:  (Bt*H1, W1*Cin)     bf16, Bt stacked (unpadded) image row slabs
    w1_ref: (3, W1*Cin, W1*C1)  bf16 banded weights, cols (parity, wo, cout)
    b1_ref: (1, W1*C1)          f32 bias tiled over output pixels
    w2_ref: (3, W2*C1, W2*C2)   bf16
    b2_ref: (1, W2*C2)          f32
    o_ref:  (Bt, H3, W3*C2)     f32 pooled output slab (lane-dense: 128)
    """
    bt, h3, _ = o_ref.shape
    h1 = x_ref.shape[0] // bt
    h2 = h1 // 2

    x = x_ref[...]                                        # (Bt*H1, W1*Cin) bf16

    # ---- stage 1 ---------------------------------------------------------
    acc1 = _banded_conv3x3(x, w1_ref, bt, h1)             # (Bt*H1, W1*C1) f32
    acc1 = jnp.maximum(acc1 + b1_ref[...], 0.0)           # bias + ReLU (VPU)
    p1 = _maxpool2x2(acc1)                                # (Bt*H2, W2*C1) f32

    # ---- stage 2 (intermediate never leaves the core) ----------------------
    x2 = p1.astype(jnp.bfloat16)
    acc2 = _banded_conv3x3(x2, w2_ref, bt, h2)            # (Bt*H2, W2*C2) f32
    acc2 = jnp.maximum(acc2 + b2_ref[...], 0.0)
    p2 = _maxpool2x2(acc2)                                # (Bt*H3, W3*C2) f32

    # Lane-dense per-image stores (W3*C2 == 128 here).
    for b in range(bt):                                   # static unroll
        o_ref[b, :, :] = p2[b * h3:(b + 1) * h3, :].astype(o_ref.dtype)


# ------------------------- one-time parameter prep ---------------------------

def _make_banded_weight(w_hwio, width):
    """(3,3,Cin,Cout) conv weight -> 3 banded matmul matrices (unpadded width).

    Returns (3, W*Cin, W*Cout).  Band entry [(w_in, ci), (w_out, co)] =
    w[dh, w_in - w_out + 1, ci, co] when the tap is in range, else 0 — i.e.
    the "same" zero-padding in W is baked into the band.  Output columns are
    permuted to (w_parity, w_half, cout) so the kernel's width pooling is a
    single lane-aligned half-split max and the pooled result comes out in the
    standard (w, c) lane flatten for the next stage.
    """
    kh, kw, cin, cout = w_hwio.shape
    wo_half = width // 2
    w_in = jnp.arange(width)[:, None]                 # (W, 1) input column
    w_out = jnp.arange(width)[None, :]                # (1, W) output column
    dw = w_in - w_out + 1                             # tap index
    valid = (dw >= 0) & (dw < kw)
    dwc = jnp.clip(dw, 0, kw - 1)

    mats = []
    for dh in range(kh):
        m = w_hwio[dh][dwc]                                   # (W, W, Cin, Cout)
        m = jnp.where(valid[:, :, None, None], m, 0.0)
        m = jnp.transpose(m, (0, 2, 1, 3))                    # (Win, Cin, Wout, Cout)
        m = m.reshape(width * cin, wo_half, 2, cout)          # w_out = 2*wo + parity
        m = jnp.transpose(m, (0, 2, 1, 3))                    # (.., parity, wo, cout)
        m = m.reshape(width * cin, width * cout)
        mats.append(m)
    return jnp.stack(mats, axis=0)                            # (3, W*Cin, W*Cout)


def prepare_params(params, width):
    """One-time prep (hoisted out of the forward pass): banded bf16 weights and
    W-tiled f32 biases.  None of this runs per forward call anymore."""
    w1 = params["w1"]
    w2 = params["w2"]
    width2 = width // 2
    return {
        "w1b": _make_banded_weight(w1, width).astype(jnp.bfloat16),
        "b1t": jnp.tile(params["b1"], width)[None, :].astype(jnp.float32),
        "w2b": _make_banded_weight(w2, width2).astype(jnp.bfloat16),
        "b2t": jnp.tile(params["b2"], width2)[None, :].astype(jnp.float32),
    }


# ------------------------------ pallas wrapper --------------------------------

def _pick_block_images(n):
    """Images per grid step.  Keep >= 2 'parallel' grid steps when the batch
    allows (so both of v7x's TensorCores get work); within that take the
    largest divisor of n (bigger stacked MXU M, fewer per-step overheads),
    capped at 8 so the block-diagonal shift matmuls stay a small fraction of
    the main matmul work."""
    best = 1
    for d in range(1, min(n, 8) + 1):
        if n % d == 0 and (n // d >= 2 or n == 1):
            best = d
    return best


def vgg_features_fused(x_rows, w1b, b1t, w2b, b2t, *, n_images, h1):
    """x_rows: (N*H1, W1*Cin) bf16 stacked image slabs -> (N, H3, W3*C2) f32."""
    total_rows, k1 = x_rows.shape
    assert total_rows == n_images * h1
    h3 = h1 // 4
    half_out = w2b.shape[2] // 2                       # = W3 * C2 (128 here)
    bt = _pick_block_images(n_images)
    grid = (n_images // bt,)

    return pl.pallas_call(
        _vgg_fused_kernel,
        grid=grid,                                      # pipelined over image blocks
        in_specs=[
            pl.BlockSpec((bt * h1, k1), lambda n: (n, 0)),
            # Constant index_maps keep the weights/biases VMEM-resident.
            # (On v7x one could also single-buffer these constant blocks to
            #  save VMEM; not needed at this size.)
            pl.BlockSpec(w1b.shape, lambda n: (0, 0, 0)),
            pl.BlockSpec(b1t.shape, lambda n: (0, 0)),
            pl.BlockSpec(w2b.shape, lambda n: (0, 0, 0)),
            pl.BlockSpec(b2t.shape, lambda n: (0, 0)),
        ],
        out_specs=pl.BlockSpec((bt, h3, half_out), lambda n: (n, 0, 0)),
        out_shape=jax.ShapeDtypeStruct((n_images, h3, half_out), jnp.float32),
        compiler_params=pltpu.CompilerParams(
            dimension_semantics=("parallel",)),          # megacore on v7x
    )(x_rows, w1b, b1t, w2b, b2t)


@jax.jit
def vgg_forward(x_nchw, prep):
    """Matches VGG.forward: x = features(x); return x.view(N, -1)."""
    N, Cin, H1, W1 = x_nchw.shape
    W2 = W1 // 2
    H3, W3 = H1 // 4, W1 // 4
    C2 = prep["b2t"].shape[1] // W2
    assert prep["w1b"].shape[1] == W1 * Cin, "prepared params don't match input"

    # Boundary glue (single XLA fusion): NCHW -> NHWC, bf16 cast, row-stack.
    x = jnp.transpose(x_nchw, (0, 2, 3, 1)).astype(jnp.bfloat16)
    x_rows = x.reshape(N * H1, W1 * Cin)

    y = vgg_features_fused(x_rows, prep["w1b"], prep["b1t"],
                           prep["w2b"], prep["b2t"], n_images=N, h1=H1)

    # Flatten in NCHW order, like PyTorch's x.view(N, -1).
    y = y.reshape(N, H3, W3, C2)
    return jnp.transpose(y, (0, 3, 1, 2)).reshape(N, -1)


# ------------------------- params & pure-JAX reference -----------------------

def init_params(key, cin=4, c1=16, c2=32, num_classes=128):
    k1, k2, k3 = jax.random.split(key, 3)
    # kaiming_normal_(mode='fan_out', nonlinearity='relu'): std = sqrt(2/(Cout*kh*kw))
    std1 = math.sqrt(2.0 / (c1 * 3 * 3))
    std2 = math.sqrt(2.0 / (c2 * 3 * 3))
    return {
        "w1": jax.random.normal(k1, (3, 3, cin, c1), jnp.float32) * std1,  # HWIO
        "b1": jnp.zeros((c1,), jnp.float32),
        "w2": jax.random.normal(k2, (3, 3, c1, c2), jnp.float32) * std2,   # HWIO
        "b2": jnp.zeros((c2,), jnp.float32),
        # Classifier from __init__ (Linear(128*5*5, num_classes)); NOT used in
        # forward (dead parameters), initialized for fidelity only.
        "fc_w": jax.random.normal(k3, (num_classes, 128 * 5 * 5), jnp.float32) * 0.01,
        "fc_b": jnp.zeros((num_classes,), jnp.float32),
    }


def vgg_forward_ref(x_nchw, params):
    """Pure-JAX reference with the same bf16-in / f32-accumulate numerics."""
    def conv_relu_pool(x, w_hwio, b):
        y = jax.lax.conv_general_dilated(
            x.astype(jnp.bfloat16), w_hwio.astype(jnp.bfloat16),
            window_strides=(1, 1), padding="SAME",
            dimension_numbers=("NCHW", "HWIO", "NCHW"),
            preferred_element_type=jnp.float32)
        y = jax.nn.relu(y + b[None, :, None, None])
        return jax.lax.reduce_window(
            y, -jnp.inf, jax.lax.max,
            window_dimensions=(1, 1, 2, 2), window_strides=(1, 1, 2, 2),
            padding="VALID")

    y1 = conv_relu_pool(x_nchw, params["w1"], params["b1"])
    y1 = y1.astype(jnp.bfloat16)          # kernel feeds layer-2 with bf16 acts
    y2 = conv_relu_pool(y1.astype(jnp.float32), params["w2"], params["b2"])
    return y2.reshape(y2.shape[0], -1)


# --------------------------------- main ---------------------------------------

if __name__ == "__main__":
    key = jax.random.PRNGKey(0)
    kp, kx = jax.random.split(key)
    params = init_params(kp)
    prep = prepare_params(params, width=16)       # one-time, out of the fwd path

    # NCHW input, like PyTorch.
    x = jax.random.normal(kx, (2, 4, 16, 16), jnp.float32)
    out = jax.block_until_ready(vgg_forward(x, prep))
    ref = jax.block_until_ready(vgg_forward_ref(x, params))
    assert out.shape == (2, 32 * 4 * 4), out.shape
    err = float(jnp.max(jnp.abs(out - ref)))
    assert jnp.allclose(out, ref, atol=3e-2, rtol=3e-2), err

    # Exercise the multi-image-per-grid-step path (N=8 -> 4 images/step,
    # 2 'parallel' grid steps, stacked MXU M = 64).
    x8 = jax.random.normal(jax.random.PRNGKey(1), (8, 4, 16, 16), jnp.float32)
    out8 = jax.block_until_ready(vgg_forward(x8, prep))
    ref8 = jax.block_until_ready(vgg_forward_ref(x8, params))
    err8 = float(jnp.max(jnp.abs(out8 - ref8)))
    assert jnp.allclose(out8, ref8, atol=3e-2, rtol=3e-2), err8

    print("KERNEL_OK")
</pallas_src>

<mosaic_0001>
module attributes {stable_mosaic.version = 11 : i64} {
  func.func @_vgg_fused_kernel(%arg0: i32, %arg1: memref<16x64xbf16, #tpu.memory_space<vmem>>, %arg2: memref<3x64x256xbf16, #tpu.memory_space<vmem>>, %arg3: memref<1x256xf32, #tpu.memory_space<vmem>>, %arg4: memref<3x128x256xbf16, #tpu.memory_space<vmem>>, %arg5: memref<1x256xf32, #tpu.memory_space<vmem>>, %arg6: memref<1x4x128xf32, #tpu.memory_space<vmem>>) attributes {dimension_semantics = [#tpu.dimension_semantics<parallel>], iteration_bounds = array<i64: 2>, scalar_prefetch = 0 : i64, scratch_operands = 0 : i64, tpu.core_type = #tpu.core_type<tc>, window_params = [{transform_indices = @transform_0, window_bounds = array<i64: 16, 64>}, {pipeline_mode = #tpu.pipeline_mode<synchronous>, transform_indices = @transform_1, window_bounds = array<i64: 3, 64, 256>}, {pipeline_mode = #tpu.pipeline_mode<synchronous>, transform_indices = @transform_2, window_bounds = array<i64: 1, 256>}, {pipeline_mode = #tpu.pipeline_mode<synchronous>, transform_indices = @transform_3, window_bounds = array<i64: 3, 128, 256>}, {pipeline_mode = #tpu.pipeline_mode<synchronous>, transform_indices = @transform_4, window_bounds = array<i64: 1, 256>}, {transform_indices = @transform_5, window_bounds = array<i64: 1, 4, 128>}]} {
    %c0 = arith.constant 0 : index
    %c0_0 = arith.constant 0 : index
    %0 = vector.load %arg1[%c0, %c0_0] : memref<16x64xbf16, #tpu.memory_space<vmem>>, vector<16x64xbf16>
    %1 = tpu.iota {dimensions = array<i32: 0>} : vector<16x16xi32>
    %2 = tpu.iota {dimensions = array<i32: 1>} : vector<16x16xi32>
    %c1_i32 = arith.constant 1 : i32
    %3 = vector.broadcast %c1_i32 : i32 to vector<16x16xi32>
    %4 = arith.subi %1, %3 : vector<16x16xi32>
    %5 = arith.cmpi eq, %2, %4 : vector<16x16xi32>
    %c16_i32 = arith.constant 16 : i32
    %c0_i32 = arith.constant 0 : i32
    %6 = arith.cmpi eq, %c16_i32, %c0_i32 : i32
    %c1_i32_1 = arith.constant 1 : i32
    %7 = arith.select %6, %c1_i32_1, %c16_i32 : i32
    %8 = vector.broadcast %7 : i32 to vector<16x16xi32>
    %9 = arith.remsi %1, %8 : vector<16x16xi32>
    %c0_i32_2 = arith.constant 0 : i32
    %10 = vector.broadcast %c0_i32_2 : i32 to vector<16x16xi32>
    %11 = arith.cmpi ne, %9, %10 : vector<16x16xi32>
    %c0_i32_3 = arith.constant 0 : i32
    %12 = vector.broadcast %c0_i32_3 : i32 to vector<16x16xi32>
    %13 = arith.cmpi slt, %9, %12 : vector<16x16xi32>
    %c0_i32_4 = arith.constant 0 : i32
    %14 = arith.cmpi slt, %7, %c0_i32_4 : i32
    %15 = vector.broadcast %14 : i1 to vector<16x16xi1>
    %16 = vector.broadcast %15 : vector<16x16xi1> to vector<16x16xi1>
    %17 = arith.xori %13, %16 : vector<16x16xi1>
    %18 = arith.andi %17, %11 : vector<16x16xi1>
    %19 = vector.broadcast %7 : i32 to vector<16x16xi32>
    %20 = arith.addi %9, %19 : vector<16x16xi32>
    %21 = arith.select %18, %20, %9 : vector<16x16xi1>, vector<16x16xi32>
    %c0_i32_5 = arith.constant 0 : i32
    %22 = vector.broadcast %c0_i32_5 : i32 to vector<16x16xi32>
    %23 = arith.cmpi ne, %21, %22 : vector<16x16xi32>
    %24 = arith.andi %5, %23 : vector<16x16xi1>
    %cst = arith.constant 1.000000e+00 : f32
    %cst_6 = arith.constant 0.000000e+00 : f32
    %25 = vector.broadcast %cst : f32 to vector<16x16xf32>
    %26 = vector.broadcast %cst_6 : f32 to vector<16x16xf32>
    %27 = arith.select %24, %25, %26 : vector<16x16xi1>, vector<16x16xf32>
    %28 = arith.truncf %27 : vector<16x16xf32> to vector<16x16xbf16>
    %c1_i32_7 = arith.constant 1 : i32
    %29 = vector.broadcast %c1_i32_7 : i32 to vector<16x16xi32>
    %30 = arith.addi %1, %29 : vector<16x16xi32>
    %31 = arith.cmpi eq, %2, %30 : vector<16x16xi32>
    %c16_i32_8 = arith.constant 16 : i32
    %c0_i32_9 = arith.constant 0 : i32
    %32 = arith.cmpi eq, %c16_i32_8, %c0_i32_9 : i32
    %c1_i32_10 = arith.constant 1 : i32
    %33 = arith.select %32, %c1_i32_10, %c16_i32_8 : i32
    %34 = vector.broadcast %33 : i32 to vector<16x16xi32>
    %35 = arith.remsi %1, %34 : vector<16x16xi32>
    %c0_i32_11 = arith.constant 0 : i32
    %36 = vector.broadcast %c0_i32_11 : i32 to vector<16x16xi32>
    %37 = arith.cmpi ne, %35, %36 : vector<16x16xi32>
    %c0_i32_12 = arith.constant 0 : i32
    %38 = vector.broadcast %c0_i32_12 : i32 to vector<16x16xi32>
    %39 = arith.cmpi slt, %35, %38 : vector<16x16xi32>
    %c0_i32_13 = arith.constant 0 : i32
    %40 = arith.cmpi slt, %33, %c0_i32_13 : i32
    %41 = vector.broadcast %40 : i1 to vector<16x16xi1>
    %42 = vector.broadcast %41 : vector<16x16xi1> to vector<16x16xi1>
    %43 = arith.xori %39, %42 : vector<16x16xi1>
    %44 = arith.andi %43, %37 : vector<16x16xi1>
    %45 = vector.broadcast %33 : i32 to vector<16x16xi32>
    %46 = arith.addi %35, %45 : vector<16x16xi32>
    %47 = arith.select %44, %46, %35 : vector<16x16xi1>, vector<16x16xi32>
    %c15_i32 = arith.constant 15 : i32
    %48 = vector.broadcast %c15_i32 : i32 to vector<16x16xi32>
    %49 = arith.cmpi ne, %47, %48 : vector<16x16xi32>
    %50 = arith.andi %31, %49 : vector<16x16xi1>
    %cst_14 = arith.constant 1.000000e+00 : f32
    %cst_15 = arith.constant 0.000000e+00 : f32
    %51 = vector.broadcast %cst_14 : f32 to vector<16x16xf32>
    %52 = vector.broadcast %cst_15 : f32 to vector<16x16xf32>
    %53 = arith.select %50, %51, %52 : vector<16x16xi1>, vector<16x16xf32>
    %54 = arith.truncf %53 : vector<16x16xf32> to vector<16x16xbf16>
    %cst_16 = arith.constant dense<0.000000e+00> : vector<16x64xf32>
    %55 = tpu.matmul %28, %0, %cst_16 {dimension_numbers = #tpu.dot_dimension_numbers<[1], [0], [0], [1], [0, 0, 1, 1], [], []>} : vector<16x16xbf16>, vector<16x64xbf16>, vector<16x64xf32> -> vector<16x64xf32>
    %56 = arith.truncf %55 : vector<16x64xf32> to vector<16x64xbf16>
    %cst_17 = arith.constant dense<0.000000e+00> : vector<16x64xf32>
    %57 = tpu.matmul %54, %0, %cst_17 {dimension_numbers = #tpu.dot_dimension_numbers<[1], [0], [0], [1], [0, 0, 1, 1], [], []>} : vector<16x16xbf16>, vector<16x64xbf16>, vector<16x64xf32> -> vector<16x64xf32>
    %58 = arith.truncf %57 : vector<16x64xf32> to vector<16x64xbf16>
    %c0_18 = arith.constant 0 : index
    %c0_19 = arith.constant 0 : index
    %c0_20 = arith.constant 0 : index
    %59 = vector.load %arg2[%c0_18, %c0_19, %c0_20] : memref<3x64x256xbf16, #tpu.memory_space<vmem>>, vector<1x64x256xbf16>
    %60 = vector.shape_cast %59 : vector<1x64x256xbf16> to vector<64x256xbf16>
    %cst_21 = arith.constant dense<0.000000e+00> : vector<16x256xf32>
    %61 = tpu.matmul %56, %60, %cst_21 {dimension_numbers = #tpu.dot_dimension_numbers<[1], [0], [0], [1], [0, 0, 1, 1], [], []>} : vector<16x64xbf16>, vector<64x256xbf16>, vector<16x256xf32> -> vector<16x256xf32>
    %c1 = arith.constant 1 : index
    %c0_22 = arith.constant 0 : index
    %c0_23 = arith.constant 0 : index
    %62 = vector.load %arg2[%c1, %c0_22, %c0_23] : memref<3x64x256xbf16, #tpu.memory_space<vmem>>, vector<1x64x256xbf16>
    %63 = vector.shape_cast %62 : vector<1x64x256xbf16> to vector<64x256xbf16>
    %cst_24 = arith.constant dense<0.000000e+00> : vector<16x256xf32>
    %64 = tpu.matmul %0, %63, %cst_24 {dimension_numbers = #tpu.dot_dimension_numbers<[1], [0], [0], [1], [0, 0, 1, 1], [], []>} : vector<16x64xbf16>, vector<64x256xbf16>, vector<16x256xf32> -> vector<16x256xf32>
    %65 = arith.addf %61, %64 : vector<16x256xf32>
    %c2 = arith.constant 2 : index
    %c0_25 = arith.constant 0 : index
    %c0_26 = arith.constant 0 : index
    %66 = vector.load %arg2[%c2, %c0_25, %c0_26] : memref<3x64x256xbf16, #tpu.memory_space<vmem>>, vector<1x64x256xbf16>
    %67 = vector.shape_cast %66 : vector<1x64x256xbf16> to vector<64x256xbf16>
    %cst_27 = arith.constant dense<0.000000e+00> : vector<16x256xf32>
    %68 = tpu.matmul %58, %67, %cst_27 {dimension_numbers = #tpu.dot_dimension_numbers<[1], [0], [0], [1], [0, 0, 1, 1], [], []>} : vector<16x64xbf16>, vector<64x256xbf16>, vector<16x256xf32> -> vector<16x256xf32>
    %69 = arith.addf %65, %68 : vector<16x256xf32>
    %c0_28 = arith.constant 0 : index
    %c0_29 = arith.constant 0 : index
    %70 = vector.load %arg3[%c0_28, %c0_29] : memref<1x256xf32, #tpu.memory_space<vmem>>, vector<1x256xf32>
    %71 = vector.broadcast %70 : vector<1x256xf32> to vector<16x256xf32>
    %72 = arith.addf %69, %71 : vector<16x256xf32>
    %cst_30 = arith.constant 0.000000e+00 : f32
    %73 = vector.broadcast %cst_30 : f32 to vector<16x256xf32>
    %74 = arith.maximumf %72, %73 : vector<16x256xf32>
    %75 = vector.shape_cast %74 : vector<16x256xf32> to vector<8x2x256xf32>
    %76 = vector.extract_strided_slice %75 {offsets = [0, 0, 0], sizes = [8, 1, 256], strides = [1, 1, 1]} : vector<8x2x256xf32> to vector<8x1x256xf32>
    %77 = vector.shape_cast %76 : vector<8x1x256xf32> to vector<8x256xf32>
    %78 = vector.extract_strided_slice %75 {offsets = [0, 1, 0], sizes = [8, 1, 256], strides = [1, 1, 1]} : vector<8x2x256xf32> to vector<8x1x256xf32>
    %79 = vector.shape_cast %78 : vector<8x1x256xf32> to vector<8x256xf32>
    %80 = arith.maximumf %77, %79 : vector<8x256xf32>
    %81 = vector.extract_strided_slice %80 {offsets = [0, 0], sizes = [8, 128], strides = [1, 1]} : vector<8x256xf32> to vector<8x128xf32>
    %82 = vector.extract_strided_slice %80 {offsets = [0, 128], sizes = [8, 128], strides = [1, 1]} : vector<8x256xf32> to vector<8x128xf32>
    %83 = arith.maximumf %81, %82 : vector<8x128xf32>
    %84 = arith.truncf %83 : vector<8x128xf32> to vector<8x128xbf16>
    %85 = tpu.iota {dimensions = array<i32: 0>} : vector<8x8xi32>
    %86 = tpu.iota {dimensions = array<i32: 1>} : vector<8x8xi32>
    %c1_i32_31 = arith.constant 1 : i32
    %87 = vector.broadcast %c1_i32_31 : i32 to vector<8x8xi32>
    %88 = arith.subi %85, %87 : vector<8x8xi32>
    %89 = arith.cmpi eq, %86, %88 : vector<8x8xi32>
    %c8_i32 = arith.constant 8 : i32
    %c0_i32_32 = arith.constant 0 : i32
    %90 = arith.cmpi eq, %c8_i32, %c0_i32_32 : i32
    %c1_i32_33 = arith.constant 1 : i32
    %91 = arith.select %90, %c1_i32_33, %c8_i32 : i32
    %92 = vector.broadcast %91 : i32 to vector<8x8xi32>
    %93 = arith.remsi %85, %92 : vector<8x8xi32>
    %c0_i32_34 = arith.constant 0 : i32
    %94 = vector.broadcast %c0_i32_34 : i32 to vector<8x8xi32>
    %95 = arith.cmpi ne, %93, %94 : vector<8x8xi32>
    %c0_i32_35 = arith.constant 0 : i32
    %96 = vector.broadcast %c0_i32_35 : i32 to vector<8x8xi32>
    %97 = arith.cmpi slt, %93, %96 : vector<8x8xi32>
    %c0_i32_36 = arith.constant 0 : i32
    %98 = arith.cmpi slt, %91, %c0_i32_36 : i32
    %99 = vector.broadcast %98 : i1 to vector<8x8xi1>
    %100 = vector.broadcast %99 : vector<8x8xi1> to vector<8x8xi1>
    %101 = arith.xori %97, %100 : vector<8x8xi1>
    %102 = arith.andi %101, %95 : vector<8x8xi1>
    %103 = vector.broadcast %91 : i32 to vector<8x8xi32>
    %104 = arith.addi %93, %103 : vector<8x8xi32>
    %105 = arith.select %102, %104, %93 : vector<8x8xi1>, vector<8x8xi32>
    %c0_i32_37 = arith.constant 0 : i32
    %106 = vector.broadcast %c0_i32_37 : i32 to vector<8x8xi32>
    %107 = arith.cmpi ne, %105, %106 : vector<8x8xi32>
    %108 = arith.andi %89, %107 : vector<8x8xi1>
    %cst_38 = arith.constant 1.000000e+00 : f32
    %cst_39 = arith.constant 0.000000e+00 : f32
    %109 = vector.broadcast %cst_38 : f32 to vector<8x8xf32>
    %110 = vector.broadcast %cst_39 : f32 to vector<8x8xf32>
    %111 = arith.select %108, %109, %110 : vector<8x8xi1>, vector<8x8xf32>
    %112 = arith.truncf %111 : vector<8x8xf32> to vector<8x8xbf16>
    %c1_i32_40 = arith.constant 1 : i32
    %113 = vector.broadcast %c1_i32_40 : i32 to vector<8x8xi32>
    %114 = arith.addi %85, %113 : vector<8x8xi32>
    %115 = arith.cmpi eq, %86, %114 : vector<8x8xi32>
    %c8_i32_41 = arith.constant 8 : i32
    %c0_i32_42 = arith.constant 0 : i32
    %116 = arith.cmpi eq, %c8_i32_41, %c0_i32_42 : i32
    %c1_i32_43 = arith.constant 1 : i32
    %117 = arith.select %116, %c1_i32_43, %c8_i32_41 : i32
    %118 = vector.broadcast %117 : i32 to vector<8x8xi32>
    %119 = arith.remsi %85, %118 : vector<8x8xi32>
    %c0_i32_44 = arith.constant 0 : i32
    %120 = vector.broadcast %c0_i32_44 : i32 to vector<8x8xi32>
    %121 = arith.cmpi ne, %119, %120 : vector<8x8xi32>
    %c0_i32_45 = arith.constant 0 : i32
    %122 = vector.broadcast %c0_i32_45 : i32 to vector<8x8xi32>
    %123 = arith.cmpi slt, %119, %122 : vector<8x8xi32>
    %c0_i32_46 = arith.constant 0 : i32
    %124 = arith.cmpi slt, %117, %c0_i32_46 : i32
    %125 = vector.broadcast %124 : i1 to vector<8x8xi1>
    %126 = vector.broadcast %125 : vector<8x8xi1> to vector<8x8xi1>
    %127 = arith.xori %123, %126 : vector<8x8xi1>
    %128 = arith.andi %127, %121 : vector<8x8xi1>
    %129 = vector.broadcast %117 : i32 to vector<8x8xi32>
    %130 = arith.addi %119, %129 : vector<8x8xi32>
    %131 = arith.select %128, %130, %119 : vector<8x8xi1>, vector<8x8xi32>
    %c7_i32 = arith.constant 7 : i32
    %132 = vector.broadcast %c7_i32 : i32 to vector<8x8xi32>
    %133 = arith.cmpi ne, %131, %132 : vector<8x8xi32>
    %134 = arith.andi %115, %133 : vector<8x8xi1>
    %cst_47 = arith.constant 1.000000e+00 : f32
    %cst_48 = arith.constant 0.000000e+00 : f32
    %135 = vector.broadcast %cst_47 : f32 to vector<8x8xf32>
    %136 = vector.broadcast %cst_48 : f32 to vector<8x8xf32>
    %137 = arith.select %134, %135, %136 : vector<8x8xi1>, vector<8x8xf32>
    %138 = arith.truncf %137 : vector<8x8xf32> to vector<8x8xbf16>
    %cst_49 = arith.constant dense<0.000000e+00> : vector<8x128xf32>
    %139 = tpu.matmul %112, %84, %cst_49 {dimension_numbers = #tpu.dot_dimension_numbers<[1], [0], [0], [1], [0, 0, 1, 1], [], []>} : vector<8x8xbf16>, vector<8x128xbf16>, vector<8x128xf32> -> vector<8x128xf32>
    %140 = arith.truncf %139 : vector<8x128xf32> to vector<8x128xbf16>
    %cst_50 = arith.constant dense<0.000000e+00> : vector<8x128xf32>
    %141 = tpu.matmul %138, %84, %cst_50 {dimension_numbers = #tpu.dot_dimension_numbers<[1], [0], [0], [1], [0, 0, 1, 1], [], []>} : vector<8x8xbf16>, vector<8x128xbf16>, vector<8x128xf32> -> vector<8x128xf32>
    %142 = arith.truncf %141 : vector<8x128xf32> to vector<8x128xbf16>
    %c0_51 = arith.constant 0 : index
    %c0_52 = arith.constant 0 : index
    %c0_53 = arith.constant 0 : index
    %143 = vector.load %arg4[%c0_51, %c0_52, %c0_53] : memref<3x128x256xbf16, #tpu.memory_space<vmem>>, vector<1x128x256xbf16>
    %144 = vector.shape_cast %143 : vector<1x128x256xbf16> to vector<128x256xbf16>
    %cst_54 = arith.constant dense<0.000000e+00> : vector<8x256xf32>
    %145 = tpu.matmul %140, %144, %cst_54 {dimension_numbers = #tpu.dot_dimension_numbers<[1], [0], [0], [1], [0, 0, 1, 1], [], []>} : vector<8x128xbf16>, vector<128x256xbf16>, vector<8x256xf32> -> vector<8x256xf32>
    %c1_55 = arith.constant 1 : index
    %c0_56 = arith.constant 0 : index
    %c0_57 = arith.constant 0 : index
    %146 = vector.load %arg4[%c1_55, %c0_56, %c0_57] : memref<3x128x256xbf16, #tpu.memory_space<vmem>>, vector<1x128x256xbf16>
    %147 = vector.shape_cast %146 : vector<1x128x256xbf16> to vector<128x256xbf16>
    %cst_58 = arith.constant dense<0.000000e+00> : vector<8x256xf32>
    %148 = tpu.matmul %84, %147, %cst_58 {dimension_numbers = #tpu.dot_dimension_numbers<[1], [0], [0], [1], [0, 0, 1, 1], [], []>} : vector<8x128xbf16>, vector<128x256xbf16>, vector<8x256xf32> -> vector<8x256xf32>
    %149 = arith.addf %145, %148 : vector<8x256xf32>
    %c2_59 = arith.constant 2 : index
    %c0_60 = arith.constant 0 : index
    %c0_61 = arith.constant 0 : index
    %150 = vector.load %arg4[%c2_59, %c0_60, %c0_61] : memref<3x128x256xbf16, #tpu.memory_space<vmem>>, vector<1x128x256xbf16>
    %151 = vector.shape_cast %150 : vector<1x128x256xbf16> to vector<128x256xbf16>
    %cst_62 = arith.constant dense<0.000000e+00> : vector<8x256xf32>
    %152 = tpu.matmul %142, %151, %cst_62 {dimension_numbers = #tpu.dot_dimension_numbers<[1], [0], [0], [1], [0, 0, 1, 1], [], []>} : vector<8x128xbf16>, vector<128x256xbf16>, vector<8x256xf32> -> vector<8x256xf32>
    %153 = arith.addf %149, %152 : vector<8x256xf32>
    %c0_63 = arith.constant 0 : index
    %c0_64 = arith.constant 0 : index
    %154 = vector.load %arg5[%c0_63, %c0_64] : memref<1x256xf32, #tpu.memory_space<vmem>>, vector<1x256xf32>
    %155 = vector.broadcast %154 : vector<1x256xf32> to vector<8x256xf32>
    %156 = arith.addf %153, %155 : vector<8x256xf32>
    %cst_65 = arith.constant 0.000000e+00 : f32
    %157 = vector.broadcast %cst_65 : f32 to vector<8x256xf32>
    %158 = arith.maximumf %156, %157 : vector<8x256xf32>
    %159 = vector.shape_cast %158 : vector<8x256xf32> to vector<4x2x256xf32>
    %160 = vector.extract_strided_slice %159 {offsets = [0, 0, 0], sizes = [4, 1, 256], strides = [1, 1, 1]} : vector<4x2x256xf32> to vector<4x1x256xf32>
    %161 = vector.shape_cast %160 : vector<4x1x256xf32> to vector<4x256xf32>
    %162 = vector.extract_strided_slice %159 {offsets = [0, 1, 0], sizes = [4, 1, 256], strides = [1, 1, 1]} : vector<4x2x256xf32> to vector<4x1x256xf32>
    %163 = vector.shape_cast %162 : vector<4x1x256xf32> to vector<4x256xf32>
    %164 = arith.maximumf %161, %163 : vector<4x256xf32>
    %165 = vector.extract_strided_slice %164 {offsets = [0, 0], sizes = [4, 128], strides = [1, 1]} : vector<4x256xf32> to vector<4x128xf32>
    %166 = vector.extract_strided_slice %164 {offsets = [0, 128], sizes = [4, 128], strides = [1, 1]} : vector<4x256xf32> to vector<4x128xf32>
    %167 = arith.maximumf %165, %166 : vector<4x128xf32>
    %c0_66 = arith.constant 0 : index
    %c0_67 = arith.constant 0 : index
    %c0_68 = arith.constant 0 : index
    %168 = vector.load %arg6[%c0_66, %c0_67, %c0_68] : memref<1x4x128xf32, #tpu.memory_space<vmem>>, vector<1x4x128xf32>
    %169 = vector.shape_cast %168 : vector<1x4x128xf32> to vector<4x128xf32>
    %170 = vector.shape_cast %167 : vector<4x128xf32> to vector<1x4x128xf32>
    tpu.vector_store %arg6[%c0_66, %c0_67, %c0_68], %170 {strides = array<i32>} : memref<1x4x128xf32, #tpu.memory_space<vmem>>, vector<1x4x128xf32>,
    return
  }
  func.func @transform_0(%arg0: i32) -> (i32, i32) {
    %c0_i32 = arith.constant 0 : i32
    %c0_i32_0 = arith.constant 0 : i32
    return %arg0, %c0_i32 : i32, i32
  }
  func.func @transform_1(%arg0: i32) -> (i32, i32, i32) {
    %c0_i32 = arith.constant 0 : i32
    %c0_i32_0 = arith.constant 0 : i32
    %c0_i32_1 = arith.constant 0 : i32
    %c0_i32_2 = arith.constant 0 : i32
    return %c0_i32, %c0_i32_0, %c0_i32_1 : i32, i32, i32
  }
  func.func @transform_2(%arg0: i32) -> (i32, i32) {
    %c0_i32 = arith.constant 0 : i32
    %c0_i32_0 = arith.constant 0 : i32
    %c0_i32_1 = arith.constant 0 : i32
    return %c0_i32, %c0_i32_0 : i32, i32
  }
  func.func @transform_3(%arg0: i32) -> (i32, i32, i32) {
    %c0_i32 = arith.constant 0 : i32
    %c0_i32_0 = arith.constant 0 : i32
    %c0_i32_1 = arith.constant 0 : i32
    %c0_i32_2 = arith.constant 0 : i32
    return %c0_i32, %c0_i32_0, %c0_i32_1 : i32, i32, i32
  }
  func.func @transform_4(%arg0: i32) -> (i32, i32) {
    %c0_i32 = arith.constant 0 : i32
    %c0_i32_0 = arith.constant 0 : i32
    %c0_i32_1 = arith.constant 0 : i32
    return %c0_i32, %c0_i32_0 : i32, i32
  }
  func.func @transform_5(%arg0: i32) -> (i32, i32, i32) {
    %c0_i32 = arith.constant 0 : i32
    %c0_i32_0 = arith.constant 0 : i32
    %c0_i32_1 = arith.constant 0 : i32
    return %arg0, %c0_i32, %c0_i32_0 : i32, i32, i32
  }
}

</mosaic_0001>

<bundles_post_ra>
// kernel: vgg_forward.1
= control target key start
LH: loop header
LB: loop body
LE: loop exit
PB: predicated region body
PF: predicated region fallthrough
CT: control target
= control target key end

     0   :  { %10 = vsyncpa [#allocation3], 0  ;;  %s1834_s18 = smov 0   ;;  %s2214_s0 = inlined_call_operand.vmem [shape: bf16[32,64], index: 0, kind: input, shape index: {}]   ;;  %s2215_s1 = inlined_call_operand.hbm [shape: bf16[3,64,256], index: 1, kind: input, shape index: {}]   ;;  %s2216_s2 = inlined_call_operand.vmem [shape: f32[1,256], index: 2, kind: input, shape index: {}]   ;;  %s2217_s3 = inlined_call_operand.vmem [shape: bf16[3,128,256], index: 3, kind: input, shape index: {}]   ;;  %s2218_s4 = inlined_call_operand.vmem [shape: f32[1,256], index: 4, kind: input, shape index: {}]   ;;  %s2219_s5 = inlined_call_operand.vmem [shape: f32[2,4,128], index: 5, kind: output, shape index: {}]  }
   0x1 LB: > { %s168_s21 = sshll.u32 %s2215_s1, 4  ;;  %s1843_s22 = sadd.s32 4294967295, %s1798_s18   ;;  %s1798_s18 = sphi %s1834_s18, %s16_s18   ;;  %s169_s21 = int_to_ptr.hbm [resolvable:$true] %s168_s21 }
   0x2   : > { %p1305_p0 = scmp.ge.s32.totalorder %s1798_s18, 1  ;;  %p157_p1 = scmp.lt.s32.totalorder %s1798_s18, 3 }
   0x3   : > { %p1744_p2 = scmp.eq.s32.totalorder %s1843_s22, 0  ;;  %s1800_s23 = smov [#allocation2]  }
   0x4   : > { %p158_p3 = pnand %p1305_p0, %p157_p1  ;;  %s170_s24 = sshll.u32 %s1800_s23, 4  ;;  %s171_s24 = int_to_ptr.vmem [resolvable:$true] %s170_s24 }
   0x5   : > { %s1801_s25 = smov 128   ;;  %s1802_s26 = smov 8  }
   0x6   : > { %p1740_p4 = pneg %p158_p3  ;;  %204 = sbr.rel (%p158_p3) target bundleno = 624 (0x270), region = 40 }
   0x8   : > { %p1741_p5 = pnand %p1744_p2, %p1740_p4 }
   0xa   : > { %1743 = dma.hbm_to_vmem [thread:$0]  (!%p1741_p5), %s169_s21, 3072, %s171_s24, [#allocation3], %s1801_s25, %s1801_s25, %s1802_s26  }
   0xb   : > { %1793 = dma.done.wait (%p1744_p2), [#allocation3], 3072  }
   0xc   : > { %1795 = vsyncadd (%p1744_p2), [#allocation3], 4294964224  ;;  %s1310_s27 = sshll.u32 %s1843_s22, 1  ;;  %v245_v0 = vlaneseq  ;;  %vm302_vm0 = vcmask 130048   ;;  %v1678_v13 = vld [vmem:[#allocation2 + $0x74] sm:$0xf] }
   0xd   : > { %p233_p6 = scmp.lt.s32.totalorder %s1310_s27, 3  ;;  %v1803_v14 = vmov 0.0   ;;  %v1349_v17 = vld [vmem:[#allocation2 + $0x78] sm:$0xf0]  ;;  %v1347_v18 = vld [vmem:[#allocation2 + $0x70] sm:$0xf] }
   0xe   : > { %v246_v1 = vshrl.u32 %v245_v0, 7  ;;  %v249_v2 = vand.u32 127, %v245_v0  ;;  %v1679_v21 = vld [vmem:[#allocation2 + $0x74] sm:$0xf0]  ;;  %v1352_v24 = vor.u32 %v1678_v13, %v1349_v17  ;;  %v1676_v25 = vld [vmem:[#allocation2 + $0x64] sm:$0xf] }
   0xf   : > { %s2223_s27 = smov (!%p233_p6, %s1310_s27), 3  ;;  %v1341_v26 = vld [vmem:[#allocation2 + $0x68] sm:$0xf0]  ;;  %v1348_v28 = vor.u32 %v1679_v21, %v1347_v18  ;;  %v1339_v29 = vld [vmem:[#allocation2 + $0x60] sm:$0xf]  ;;  %vm396_vm13 = vcmask 523264  }
  0x10   : > { %v247_v3 = vadd.s32 8, %v246_v1  ;;  %v1313_v4 = vadd.s32 4294967295, %v246_v1  ;;  %v258_v5 = vand.u32 15, %v246_v1  ;;  %v705_v6 = vand.u32 7, %v246_v1  ;;  %s1311_s28 = sshll.u32 %s2223_s27, 2  ;;  %p238_p7 = scmp.lt.s32.totalorder %s1843_s22, 1 }
  0x11   : > { %v285_v7 = vadd.s32 1, %v246_v1  ;;  %s236_s6 = scalar_lea.vmem %s2214_s0, %s1311_s28  ;;  %v1677_v30 = vld [vmem:[#allocation2 + $0x64] sm:$0xf0]  ;;  %v1344_v32 = vor.u32 %v1676_v25, %v1341_v26  ;;  %v1674_v34 = vld [vmem:[#allocation2 + $0x54] sm:$0xf]  ;;  %vm603_vm14 = vcmask 1041408  }
  0x12   : > { %v1314_v8 = vadd.s32 4294967295, %v247_v3  ;;  %vm252_vm1 = vcmp.eq.s32.totalorder %v249_v2, %v1313_v4  ;;  %vm278_vm2 = vcmp.ne.s32.totalorder %v258_v5, 0  ;;  %vm713_vm3 = vcmp.ne.s32.totalorder %v705_v6, 0  ;;  %v1852_v9 = vld [vmem:[%s236_s6] sm:$0xff]  ;;  %v1333_v35 = vld [vmem:[#allocation2 + $0x58] sm:$0xf0] }
  0x13   : > { %vm280_vm4 = vmand %vm252_vm1, %vm278_vm2  ;;  %v265_v10 = vand.u32 15, %v247_v3  ;;  %v286_v11 = vadd.s32 1, %v247_v3  ;;  %vm287_vm5 = vcmp.eq.s32.totalorder %v249_v2, %v285_v7  ;;  %vm1854_vm6 = vcmp.ne.s32.totalorder %v705_v6, 7  ;;  %313 = vmatpush.bf16.msra.mxu0 %v1852_v9  ;;  %331 = vmatpush.bf16.msra.mxu1 %v1852_v9  ;;  %v1331_v36 = vld [vmem:[#allocation2 + $0x50] sm:$0xf]  ;;  %s2225_s22 = smov (!%p238_p7, %s1843_s22), 1 }
  0x14   : > { %vm253_vm7 = vcmp.eq.s32.totalorder %v249_v2, %v1314_v8  ;;  %v282_v15 = vsel %vm280_vm4, 1.0, %v1803_v14  ;;  %vm714_vm8 = vmand %vm252_vm1, %vm713_vm3  ;;  %v293_v16 = vsel %vm287_vm5, 1.0, %v1803_v14  ;;  %v1340_v33 = vor.u32 %v1677_v30, %v1339_v29  ;;  %v1675_v37 = vld [vmem:[#allocation2 + $0x54] sm:$0xf0]  ;;  %v1672_v38 = vld [vmem:[#allocation2 + $0x44] sm:$0xf] }
  0x15   : > { %v283_v19 = vsel %vm253_vm7, 1.0, %v1803_v14  ;;  %v1861_v20 = vsel %vm714_vm8, 1.0, %v1803_v14  ;;  %vm288_vm9 = vcmp.eq.s32.totalorder %v249_v2, %v286_v11  ;;  %vm290_vm10 = vcmp.ne.s32.totalorder %v265_v10, 15  ;;  %vm718_vm11 = vmand %vm287_vm5, %vm1854_vm6  ;;  %v1415_v40 = vld [vmem:[#allocation2 + $0xb0] sm:$0xf]  ;;  %s1312_s20 = sshll.u32 %s2225_s22, 2 }
  0x16   : > { %v284_v22 = vpack.c.bf16 %v283_v19, %v282_v15  ;;  %vm292_vm12 = vmand %vm288_vm9, %vm290_vm10  ;;  %v1866_v23 = vsel %vm718_vm11, 1.0, %v1803_v14  ;;  %v1336_v39 = vor.u32 %v1674_v34, %v1333_v35  ;;  %v1687_v41 = vld [vmem:[#allocation2 + $0xb4] sm:$0xf0]  ;;  %v1686_v42 = vld [vmem:[#allocation2 + $0xb4] sm:$0xf]  ;;  %v1332_v43 = vor.u32 %v1675_v37, %v1331_v36  ;;  %s241_s24 = scalar_lea.vmem %s2219_s5, %s1312_s20 }
  0x17   : > { %v294_v27 = vsel %vm292_vm12, 1.0, %v1803_v14  ;;  %418 = vmatpush.bf16.msrb.mxu1 %v1352_v24  ;;  %404 = vmatpush.bf16.msrb.mxu0 %v1348_v28  ;;  %v1325_v44 = vld [vmem:[#allocation2 + $0x48] sm:$0xf0]  ;;  %v1323_v45 = vld [vmem:[#allocation2 + $0x40] sm:$0xf]  ;;  %v1416_v46 = vor.u32 %v1687_v41, %v1415_v40  ;;  %vm605_vm15 = vcmask 1043458  }
  0x18   : > { %1319 = vmatmul.msk.bf16.vlgmr.msra.gmra.mxu0 %vm302_vm0, %v284_v22  ;;  %v295_v31 = vpack.c.bf16 %v294_v27, %v293_v16  ;;  %v1417_v47 = vld [vmem:[#allocation2 + $0xb8] sm:$0xf0]  ;;  %v1673_v48 = vld [vmem:[#allocation2 + $0x44] sm:$0xf0]  ;;  %v1670_v49 = vld [vmem:[#allocation2 + $0x34] sm:$0xf]  ;;  %v1328_v54 = vor.u32 %v1672_v38, %v1325_v44 }
  0x19   : > { %v1383_v50 = vld [vmem:[#allocation2 + $0x38] sm:$0xf0]  ;;  %v1420_v51 = vor.u32 %v1686_v42, %v1417_v47  ;;  %v1381_v52 = vld [vmem:[#allocation2 + $0x30] sm:$0xf]  ;;  %v1671_v53 = vld [vmem:[#allocation2 + $0x34] sm:$0xf0]  ;;  %555 = vmatpush.bf16.msra.mxu2 %v1416_v46  ;;  %v1324_v55 = vor.u32 %v1673_v48, %v1323_v45 }
  0x1a   : > { %1320 = vmatmul.msk.bf16.vlgmr.msra.gmra.mxu1 %vm302_vm0, %v295_v31  ;;  %v1386_v56 = vor.u32 %v1670_v49, %v1383_v50  ;;  %v1382_v57 = vor.u32 %v1671_v53, %v1381_v52  ;;  %v1373_v58 = vld [vmem:[#allocation2 + $0x20] sm:$0xf]  ;;  %v1669_v59 = vld [vmem:[#allocation2 + $0x24] sm:$0xf0]  ;;  %v1668_v60 = vld [vmem:[#allocation2 + $0x24] sm:$0xf] }
  0x1b   : > { %419 = vmatpush.bf16.msrb.mxu1 %v1344_v32  ;;  %405 = vmatpush.bf16.msrb.mxu0 %v1340_v33  ;;  %v1374_v61 = vor.u32 %v1669_v59, %v1373_v58  ;;  %v1375_v62 = vld [vmem:[#allocation2 + $0x28] sm:$0xf0]  ;;  %v1407_v63 = vld [vmem:[#allocation2 + $0xa0] sm:$0xf]  ;;  %v1685_v0 = vld [vmem:[#allocation2 + $0xa4] sm:$0xf0] }
  0x1c   : > { %569 = vmatpush.bf16.msra.mxu3 %v1420_v51  ;;  %v1378_v1 = vor.u32 %v1668_v60, %v1375_v62  ;;  %v1408_v2 = vor.u32 %v1685_v0, %v1407_v63  ;;  %v1684_v3 = vld [vmem:[#allocation2 + $0xa4] sm:$0xf]  ;;  %v1409_v4 = vld [vmem:[#allocation2 + $0xa8] sm:$0xf0]  ;;  %v1365_v6 = vld [vmem:[#allocation2 + $0x10] sm:$0xf] }
  0x1d   : > { %v1412_v5 = vor.u32 %v1684_v3, %v1409_v4  ;;  %v1667_v7 = vld [vmem:[#allocation2 + $0x14] sm:$0xf0]  ;;  %v1666_v8 = vld [vmem:[#allocation2 + $0x14] sm:$0xf]  ;;  %v1367_v10 = vld [vmem:[#allocation2 + $0x18] sm:$0xf0] }
  0x1e   : > { %556 = vmatpush.bf16.msra.mxu2 %v1408_v2  ;;  %v1399_v11 = vld [vmem:[#allocation2 + $0x90] sm:$0xf]  ;;  %v1683_v12 = vld [vmem:[#allocation2 + $0x94] sm:$0xf0]  ;;  %v1370_v13 = vor.u32 %v1666_v8, %v1367_v10  ;;  %v1682_v15 = vld [vmem:[#allocation2 + $0x94] sm:$0xf] }
  0x1f   : > { %420 = vmatpush.bf16.msrb.mxu1 %v1336_v39  ;;  %406 = vmatpush.bf16.msrb.mxu0 %v1332_v43  ;;  %v1400_v14 = vor.u32 %v1683_v12, %v1399_v11  ;;  %v1401_v16 = vld [vmem:[#allocation2 + $0x98] sm:$0xf0]  ;;  %v1357_v18 = vld [vmem:[#allocation2] sm:$0xf]  ;;  %v1665_v19 = vld [vmem:[#allocation2 + $0x4] sm:$0xf0] }
  0x20   : > { %570 = vmatpush.bf16.msra.mxu3 %v1412_v5  ;;  %v1404_v17 = vor.u32 %v1682_v15, %v1401_v16  ;;  %v1664_v21 = vld [vmem:[#allocation2 + $0x4] sm:$0xf]  ;;  %v1358_v22 = vor.u32 %v1665_v19, %v1357_v18  ;;  %v1359_v24 = vld [vmem:[#allocation2 + $0x8] sm:$0xf0]  ;;  %v1391_v25 = vld [vmem:[#allocation2 + $0x80] sm:$0xf] }
  0x21   : > { %v1681_v26 = vld [vmem:[#allocation2 + $0x84] sm:$0xf0]  ;;  %v1362_v27 = vor.u32 %v1664_v21, %v1359_v24  ;;  %v1680_v29 = vld [vmem:[#allocation2 + $0x84] sm:$0xf]  ;;  %v1393_v30 = vld [vmem:[#allocation2 + $0x88] sm:$0xf0] }
  0x22   : > { %557 = vmatpush.bf16.msra.mxu2 %v1400_v14  ;;  %v1392_v28 = vor.u32 %v1681_v26, %v1391_v25  ;;  %v1396_v31 = vor.u32 %v1680_v29, %v1393_v30  ;;  %v1507_v39 = vld [vmem:[%s2217_s3 + $0xf0] sm:$0xf]  ;;  %v1719_v41 = vld [vmem:[%s2217_s3 + $0xf4] sm:$0xf0]  ;;  %v1718_v42 = vld [vmem:[%s2217_s3 + $0xf4] sm:$0xf] }
  0x23   : > { %421 = vmatpush.bf16.msrb.mxu1 %v1328_v54  ;;  %407 = vmatpush.bf16.msrb.mxu0 %v1324_v55  ;;  %v1509_v43 = vld [vmem:[%s2217_s3 + $0xf8] sm:$0xf0]  ;;  %v1508_v44 = vor.u32 %v1719_v41, %v1507_v39  ;;  %v1499_v46 = vld [vmem:[%s2217_s3 + $0xe0] sm:$0xf]  ;;  %v1717_v47 = vld [vmem:[%s2217_s3 + $0xe4] sm:$0xf0] }
  0x24   : > { %571 = vmatpush.bf16.msra.mxu3 %v1404_v17  ;;  %v1512_v45 = vor.u32 %v1718_v42, %v1509_v43  ;;  %v1716_v48 = vld [vmem:[%s2217_s3 + $0xe4] sm:$0xf]  ;;  %v1500_v49 = vor.u32 %v1717_v47, %v1499_v46  ;;  %v1501_v50 = vld [vmem:[%s2217_s3 + $0xe8] sm:$0xf0]  ;;  %v1491_v52 = vld [vmem:[%s2217_s3 + $0xd0] sm:$0xf] }
  0x25   : > { %v1504_v51 = vor.u32 %v1716_v48, %v1501_v50  ;;  %v1715_v53 = vld [vmem:[%s2217_s3 + $0xd4] sm:$0xf0]  ;;  %v1714_v54 = vld [vmem:[%s2217_s3 + $0xd4] sm:$0xf]  ;;  %v1483_v60 = vld [vmem:[%s2217_s3 + $0xc0] sm:$0xf] }
  0x26   : > { %558 = vmatpush.bf16.msra.mxu2 %v1392_v28  ;;  %v1712_v62 = vld [vmem:[%s2217_s3 + $0xc4] sm:$0xf]  ;;  %v1485_v0 = vld [vmem:[%s2217_s3 + $0xc8] sm:$0xf0]  ;;  %v1475_v2 = vld [vmem:[%s2217_s3 + $0xb0] sm:$0xf] }
  0x27   : > { %489 = vmatpush.bf16.msra.mxu1 %v1386_v56  ;;  %475 = vmatpush.bf16.msra.mxu0 %v1382_v57  ;;  %v1492_v56 = vor.u32 %v1715_v53, %v1491_v52  ;;  %v1493_v57 = vld [vmem:[%s2217_s3 + $0xd8] sm:$0xf0]  ;;  %v1711_v3 = vld [vmem:[%s2217_s3 + $0xb4] sm:$0xf0]  ;;  %v1710_v4 = vld [vmem:[%s2217_s3 + $0xb4] sm:$0xf] }
  0x28   : > { %1353 = vmatmul.msk.bf16.vlgmr.msrb.gmra.mxu0 %vm396_vm13, %v1852_v9  ;;  %572 = vmatpush.bf16.msra.mxu3 %v1396_v31  ;;  %v1496_v58 = vor.u32 %v1714_v54, %v1493_v57  ;;  %v1476_v5 = vor.u32 %v1711_v3, %v1475_v2  ;;  %v1945_v10 = vld [vmem:[%s2216_s2] sm:$0x3]  ;;  %v1709_v12 = vld [vmem:[%s2217_s3 + $0xa4] sm:$0xf0]  ;;  %v1469_v15 = vld [vmem:[%s2217_s3 + $0xa8] sm:$0xf0] }
  0x29   : > { %v1467_v11 = vld [vmem:[%s2217_s3 + $0xa0] sm:$0xf]  ;;  %v585_v16 = vperm.slane %v1945_v10, 0  ;;  %v586_v17 = vperm.slane %v1945_v10, 1  ;;  %v1707_v24 = vld [vmem:[%s2217_s3 + $0x94] sm:$0xf0] }
  0x2a   : > { %1354 = vmatmul.msk.bf16.vlgmr.msrb.gmra.mxu1 %vm396_vm13, %v1852_v9  ;;  %v1366_v9 = vor.u32 %v1667_v7, %v1365_v6  ;;  %912 = vmatpush.bf16.msrb.mxu2 %v1508_v44  ;;  %v1477_v6 = vld [vmem:[%s2217_s3 + $0xb8] sm:$0xf0]  ;;  %v1468_v14 = vor.u32 %v1709_v12, %v1467_v11  ;;  %v1706_v25 = vld [vmem:[%s2217_s3 + $0x94] sm:$0xf]  ;;  %v1451_v30 = vld [vmem:[%s2217_s3 + $0x80] sm:$0xf] }
  0x2b   : > { %476 = vmatpush.bf16.msra.mxu0 %v1374_v61  ;;  %490 = vmatpush.bf16.msra.mxu1 %v1378_v1  ;;  %v1713_v61 = vld [vmem:[%s2217_s3 + $0xc4] sm:$0xf0]  ;;  %v1488_v1 = vor.u32 %v1712_v62, %v1485_v0  ;;  %v1480_v7 = vor.u32 %v1710_v4, %v1477_v6  ;;  %v1461_v29 = vld [vmem:[%s2217_s3 + $0x98] sm:$0xf0]  ;;  %vm608_vm0 = vcmask 1045508   ;;  %vm611_vm1 = vcmask 1045504  }
  0x2c   : > { %925 = vmatpush.bf16.msrb.mxu3 %v1512_v45  ;;  %v1484_v63 = vor.u32 %v1713_v61, %v1483_v60  ;;  %vm738_vm2 = vcmask 1041409   ;;  %vm741_vm3 = vcmask 1042434   ;;  %vm744_vm4 = vcmask 1043459  }
  0x2d   : > { %vm747_vm5 = vcmask 1044484   ;;  %vm750_vm6 = vcmask 1045509   ;;  %vm753_vm7 = vcmask 1046534   ;;  %vm756_vm8 = vcmask 1047559  }
  0x2e   : > { %913 = vmatpush.bf16.msrb.mxu2 %v1500_v49  ;;  %vm763_vm9 = vcmask 1043456   ;;  %vm759_vm10 = vcmask 64512  }
  0x2f   : > { %477 = vmatpush.bf16.msra.mxu0 %v1366_v9  ;;  %491 = vmatpush.bf16.msra.mxu1 %v1370_v13  ;;  %v1708_v13 = vld [vmem:[%s2217_s3 + $0xa4] sm:$0xf] }
  0x30   : > { %926 = vmatpush.bf16.msrb.mxu3 %v1504_v51  ;;  %v1472_v18 = vor.u32 %v1708_v13, %v1469_v15 }
  0x32   : > { %914 = vmatpush.bf16.msrb.mxu2 %v1492_v56 }
  0x33   : > { %478 = vmatpush.bf16.msra.mxu0 %v1358_v22  ;;  %492 = vmatpush.bf16.msra.mxu1 %v1362_v27  ;;  %v1459_v22 = vld [vmem:[%s2217_s3 + $0x90] sm:$0xf] }
  0x34   : > { %927 = vmatpush.bf16.msrb.mxu3 %v1496_v58  ;;  %v1460_v28 = vor.u32 %v1707_v24, %v1459_v22 }
  0x36   : > { %915 = vmatpush.bf16.msrb.mxu2 %v1484_v63 }
  0x38   : > { %928 = vmatpush.bf16.msrb.mxu3 %v1488_v1 }
  0x3a   : > { %916 = vmatpush.bf16.msrb.mxu2 %v1476_v5 }
  0x3c   : > { %929 = vmatpush.bf16.msrb.mxu3 %v1480_v7 }
  0x3e   : > { %917 = vmatpush.bf16.msrb.mxu2 %v1468_v14 }
  0x40   : > { %930 = vmatpush.bf16.msrb.mxu3 %v1472_v18 }
  0x42   : > { %918 = vmatpush.bf16.msrb.mxu2 %v1460_v28 }
  0x95   : > { %v315_v32 = vpop.f32.mrf.mxu0 }
  0x97   : > { %v333_v33 = vpop.f32.mrf.mxu1 }
  0x9d   : > { %v317_v34 = vpop.f32.mrf.mxu0 }
  0x9e   : > { %v320_v35 = vpack.c.bf16 %v317_v34, %v315_v32  ;;  %v1705_v34 = vld [vmem:[%s2217_s3 + $0x84] sm:$0xf0] }
  0x9f   : > { %v335_v36 = vpop.f32.mrf.mxu1  ;;  %v1452_v39 = vor.u32 %v1705_v34, %v1451_v30 }
  0xa0   : > { %v338_v37 = vpack.c.bf16 %v335_v36, %v333_v33  ;;  %1387 = vmatmul.msk.bf16.vlgmr.msra.gmra.mxu0 %vm396_vm13, %v320_v35  ;;  %1388 = vmatmul.msk.bf16.vlgmr.msra.gmra.mxu1 %vm396_vm13, %v320_v35  ;;  %v1464_v33 = vor.u32 %v1706_v25, %v1461_v29  ;;  %v1704_v35 = vld [vmem:[%s2217_s3 + $0x84] sm:$0xf]  ;;  %v1453_v36 = vld [vmem:[%s2217_s3 + $0x88] sm:$0xf0] }
  0xa1   : > { %919 = vmatpush.bf16.msrb.mxu2 %v1452_v39 }
  0xa2   : > { %1421 = vmatmul.msk.bf16.vlgmr.msra.gmra.mxu2 %vm396_vm13, %v338_v37  ;;  %1422 = vmatmul.msk.bf16.vlgmr.msra.gmra.mxu3 %vm396_vm13, %v338_v37 }
  0xa3   : > { %931 = vmatpush.bf16.msrb.mxu3 %v1464_v33 }
  0xa5   : > { %v409_v38 = vpop.f32.mrf.mxu0 }
  0xa7   : > { %v423_v40 = vpop.f32.mrf.mxu1 }
  0xad   : > { %v1911_v55 = vpop.f32.mrf.mxu0 }
  0xaf   : > { %v1916_v59 = vpop.f32.mrf.mxu1 }
 0x11d   : > { %v480_v8 = vpop.f32.mrf.mxu0  ;;  %v494_v9 = vpop.f32.mrf.mxu1 }
 0x11e   : > { %v481_v19 = vadd.f32 %v480_v8, %v409_v38  ;;  %v495_v21 = vadd.f32 %v494_v9, %v423_v40  ;;  %v1456_v40 = vor.u32 %v1704_v35, %v1453_v36  ;;  %v1643_v36 = vld [vmem:[%s2217_s3 + $0x160] sm:$0xf] }
 0x120   : > { %932 = vmatpush.bf16.msrb.mxu3 %v1456_v40 }
 0x125   : > { %v560_v26 = vpop.f32.mrf.mxu2  ;;  %v574_v27 = vpop.f32.mrf.mxu3 }
 0x126   : > { %v579_v31 = vadd.f32 %v560_v26, %v481_v19  ;;  %v580_v32 = vadd.f32 %v574_v27, %v495_v21  ;;  %v482_v42 = vpop.f32.mrf.mxu0  ;;  %v496_v43 = vpop.f32.mrf.mxu1  ;;  %v1651_v19 = vld [vmem:[%s2217_s3 + $0x170] sm:$0xf]  ;;  %v1735_v21 = vld [vmem:[%s2217_s3 + $0x174] sm:$0xf0]  ;;  %v1734_v27 = vld [vmem:[%s2217_s3 + $0x174] sm:$0xf] }
 0x127   : > { %v483_v46 = vadd.f32 %v482_v42, %v1911_v55  ;;  %v497_v47 = vadd.f32 %v496_v43, %v1916_v59  ;;  %v1652_v35 = vor.u32 %v1735_v21, %v1651_v19 }
 0x128   : > { %v589_v37 = vadd.f32 %v585_v16, %v579_v31  ;;  %v590_v38 = vadd.f32 %v586_v17, %v580_v32  ;;  %v1653_v32 = vld [vmem:[%s2217_s3 + $0x178] sm:$0xf0] }
 0x129   : > { %1141 = vmatpush.bf16.msra.mxu2 %v1652_v35 }
 0x12a   : > { %v594_v41 = vmax.f32 %v590_v38, 0.0  ;;  %v593_v44 = vmax.f32 %v589_v37, 0.0 }
 0x12c   : > { %v601_v45 = vrot.slane %v594_v41, 6  ;;  %v1733_v41 = vld [vmem:[%s2217_s3 + $0x164] sm:$0xf0] }
 0x12d   : > { %v562_v48 = vpop.f32.mrf.mxu2  ;;  %v576_v49 = vpop.f32.mrf.mxu3 }
 0x12e   : > { %v604_v50 = vsel %vm603_vm14, %v593_v44, %v601_v45  ;;  %v606_v51 = vsel %vm605_vm15, %v593_v44, %v601_v45  ;;  %v609_v52 = vsel %vm608_vm0, %v593_v44, %v601_v45  ;;  %v612_v53 = vsel %vm611_vm1, %v601_v45, %v593_v44 }
 0x12f   : > { %v607_v54 = vrot.slane %v606_v51, 2  ;;  %v610_v56 = vrot.slane %v609_v52, 4  ;;  %v613_v57 = vrot.slane %v612_v53, 6  ;;  %v1423_v58 = vrot.slane %v604_v50, 9  ;;  %v1645_v51 = vld [vmem:[%s2217_s3 + $0x168] sm:$0xf0] }
 0x130   : > { %v581_v60 = vadd.f32 %v562_v48, %v483_v46  ;;  %v582_v55 = vadd.f32 %v576_v49, %v497_v47  ;;  %v1656_v45 = vor.u32 %v1734_v27, %v1653_v32  ;;  %v1732_v46 = vld [vmem:[%s2217_s3 + $0x164] sm:$0xf]  ;;  %v1635_v52 = vld [vmem:[%s2217_s3 + $0x150] sm:$0xf]  ;;  %v1703_v32 = vld [vmem:[%s2217_s3 + $0x74] sm:$0xf0] }
 0x131   : > { %v1424_v61 = vrot.slane %v607_v54, 9  ;;  %v1425_v59 = vrot.slane %v610_v56, 9  ;;  %v1426_v62 = vrot.slane %v613_v57, 9  ;;  %v653_v63 = vmax.f32 %v604_v50, %v1423_v58  ;;  %v1730_v58 = vld [vmem:[%s2217_s3 + $0x154] sm:$0xf] }
 0x132   : > { %v591_v0 = vadd.f32 %v585_v16, %v581_v60  ;;  %v592_v1 = vadd.f32 %v586_v17, %v582_v55  ;;  %1154 = vmatpush.bf16.msra.mxu3 %v1656_v45 }
 0x133   : > { %v654_v2 = vmax.f32 %v607_v54, %v1424_v61  ;;  %v655_v3 = vmax.f32 %v610_v56, %v1425_v59  ;;  %v656_v4 = vmax.f32 %v613_v57, %v1426_v62  ;;  %v669_v5 = vrot.slane %v653_v63, 2  ;;  %v1731_v57 = vld [vmem:[%s2217_s3 + $0x154] sm:$0xf0]  ;;  %v1637_v62 = vld [vmem:[%s2217_s3 + $0x158] sm:$0xf0] }
 0x134   : > { %v596_v6 = vmax.f32 %v592_v1, 0.0  ;;  %v595_v11 = vmax.f32 %v591_v0, 0.0  ;;  %v1644_v56 = vor.u32 %v1733_v41, %v1643_v36  ;;  %v1648_v0 = vor.u32 %v1732_v46, %v1645_v51  ;;  %v1611_v41 = vld [vmem:[%s2217_s3 + $0x120] sm:$0xf] }
 0x135   : > { %v670_v7 = vrot.slane %v654_v2, 2  ;;  %v671_v8 = vrot.slane %v655_v3, 2  ;;  %v672_v9 = vrot.slane %v656_v4, 2  ;;  %v685_v10 = vmax.f32 %v653_v63, %v669_v5  ;;  %v1627_v5 = vld [vmem:[%s2217_s3 + $0x140] sm:$0xf] }
 0x136   : > { %v602_v12 = vrot.slane %v596_v6, 6  ;;  %1142 = vmatpush.bf16.msra.mxu2 %v1644_v56  ;;  %v1729_v6 = vld [vmem:[%s2217_s3 + $0x144] sm:$0xf0]  ;;  %1155 = vmatpush.bf16.msra.mxu3 %v1648_v0  ;;  %v716_v56 = vpack.c.bf16 %v1861_v20, %v1861_v20 }
 0x137   : > { %v686_v13 = vmax.f32 %v654_v2, %v670_v7  ;;  %v687_v14 = vmax.f32 %v655_v3, %v671_v8  ;;  %v688_v22 = vmax.f32 %v656_v4, %v672_v9  ;;  %v693_v24 = vpack.c.bf16 %v685_v10, %v685_v10 }
 0x138   : > { %v614_v15 = vsel %vm603_vm14, %v595_v11, %v602_v12  ;;  %v615_v18 = vsel %vm605_vm15, %v595_v11, %v602_v12  ;;  %v617_v16 = vsel %vm608_vm0, %v595_v11, %v602_v12  ;;  %v619_v17 = vsel %vm611_vm1, %v602_v12, %v595_v11 }
 0x139   : > { %v694_v25 = vpack.c.bf16 %v686_v13, %v686_v13  ;;  %v695_v26 = vpack.c.bf16 %v687_v14, %v687_v14  ;;  %v616_v28 = vrot.slane %v615_v18, 2  ;;  %v618_v29 = vrot.slane %v617_v16, 4  ;;  %v1728_v14 = vld [vmem:[%s2217_s3 + $0x144] sm:$0xf] }
 0x13a   : > { %v620_v30 = vrot.slane %v619_v17, 6  ;;  %v1427_v31 = vrot.slane %v614_v15, 9  ;;  %v696_v42 = vpack.c.bf16 %v688_v22, %v688_v22  ;;  %v729_v43 = vunpack.c.l.b16 %v693_v24  ;;  %v1619_v24 = vld [vmem:[%s2217_s3 + $0x130] sm:$0xf] }
 0x13b   : > { %v730_v33 = vunpack.c.l.b16 %v694_v25  ;;  %v731_v34 = vunpack.c.l.b16 %v695_v26  ;;  %v1428_v37 = vrot.slane %v616_v28, 9  ;;  %v1429_v38 = vrot.slane %v618_v29, 9  ;;  %v1727_v25 = vld [vmem:[%s2217_s3 + $0x134] sm:$0xf0] }
 0x13c   : > { %v1430_v39 = vrot.slane %v620_v30, 9  ;;  %v657_v40 = vmax.f32 %v614_v15, %v1427_v31  ;;  %v732_v63 = vunpack.c.l.b16 %v696_v42  ;;  %v1636_v8 = vor.u32 %v1731_v57, %v1635_v52  ;;  %v1629_v15 = vld [vmem:[%s2217_s3 + $0x148] sm:$0xf0]  ;;  %v1571_v31 = vld [vmem:[%s2217_s3 + $0x70] sm:$0xf] }
 0x13d   : > { %v737_v44 = vrot.slane %v730_v33, 7  ;;  %v658_v47 = vmax.f32 %v616_v28, %v1428_v37  ;;  %v659_v48 = vmax.f32 %v618_v29, %v1429_v38  ;;  %v740_v53 = vrot.slane %v731_v34, 6  ;;  %v1702_v33 = vld [vmem:[%s2217_s3 + $0x74] sm:$0xf]  ;;  %v1573_v37 = vld [vmem:[%s2217_s3 + $0x78] sm:$0xf0] }
 0x13e   : > { %v673_v49 = vrot.slane %v657_v40, 2  ;;  %v660_v50 = vmax.f32 %v620_v30, %v1430_v39  ;;  %v1640_v9 = vor.u32 %v1730_v58, %v1637_v62  ;;  %v743_v18 = vrot.slane %v732_v63, 5  ;;  %1143 = vmatpush.bf16.msra.mxu2 %v1636_v8  ;;  %v1726_v38 = vld [vmem:[%s2217_s3 + $0x134] sm:$0xf]  ;;  %v1725_v42 = vld [vmem:[%s2217_s3 + $0x124] sm:$0xf0] }
 0x13f   : > { %v739_v54 = vsel %vm738_vm2, %v737_v44, %v729_v43  ;;  %v674_v60 = vrot.slane %v658_v47, 2  ;;  %v675_v61 = vrot.slane %v659_v48, 2  ;;  %v1628_v16 = vor.u32 %v1729_v6, %v1627_v5  ;;  %v1698_v62 = vld [vmem:[%s2217_s3 + $0x54] sm:$0xf]  ;;  %v1557_v63 = vld [vmem:[%s2217_s3 + $0x58] sm:$0xf0] }
 0x140   : > { %v689_v55 = vmax.f32 %v657_v40, %v673_v49  ;;  %v676_v59 = vrot.slane %v660_v50, 2  ;;  %v742_v7 = vsel %vm741_vm3, %v740_v53, %v739_v54  ;;  %1156 = vmatpush.bf16.msra.mxu3 %v1640_v9  ;;  %v1632_v27 = vor.u32 %v1728_v14, %v1629_v15  ;;  %v1621_v40 = vld [vmem:[%s2217_s3 + $0x138] sm:$0xf0]  ;;  %v1700_v49 = vld [vmem:[%s2217_s3 + $0x64] sm:$0xf] }
 0x141   : > { %v690_v2 = vmax.f32 %v658_v47, %v674_v60  ;;  %v691_v3 = vmax.f32 %v659_v48, %v675_v61  ;;  %v745_v26 = vsel %vm744_vm4, %v743_v18, %v742_v7  ;;  %v1620_v34 = vor.u32 %v1727_v25, %v1619_v24  ;;  %v1563_v47 = vld [vmem:[%s2217_s3 + $0x60] sm:$0xf]  ;;  %v1701_v48 = vld [vmem:[%s2217_s3 + $0x64] sm:$0xf0]  ;;  %v1724_v53 = vld [vmem:[%s2217_s3 + $0x124] sm:$0xf] }
 0x142   : > { %v697_v1 = vpack.c.bf16 %v689_v55, %v689_v55  ;;  %v692_v4 = vmax.f32 %v660_v50, %v676_v59  ;;  %1144 = vmatpush.bf16.msra.mxu2 %v1628_v16  ;;  %v1572_v45 = vor.u32 %v1703_v32, %v1571_v31  ;;  %v1576_v46 = vor.u32 %v1702_v33, %v1573_v37  ;;  %v1565_v50 = vld [vmem:[%s2217_s3 + $0x68] sm:$0xf0]  ;;  %v1603_v60 = vld [vmem:[%s2217_s3 + $0x110] sm:$0xf]  ;;  %v1723_v55 = vld [vmem:[%s2217_s3 + $0x114] sm:$0xf0] }
 0x143   : > { %v698_v11 = vpack.c.bf16 %v690_v2, %v690_v2  ;;  %v699_v12 = vpack.c.bf16 %v691_v3, %v691_v3  ;;  %v1624_v51 = vor.u32 %v1726_v38, %v1621_v40  ;;  %v1612_v52 = vor.u32 %v1725_v42, %v1611_v41  ;;  %v1613_v54 = vld [vmem:[%s2217_s3 + $0x128] sm:$0xf0]  ;;  %v1699_v59 = vld [vmem:[%s2217_s3 + $0x54] sm:$0xf0]  ;;  %v1722_v2 = vld [vmem:[%s2217_s3 + $0x114] sm:$0xf] }
 0x144   : > { %v733_v10 = vunpack.c.l.b16 %v697_v1  ;;  %v700_v13 = vpack.c.bf16 %v692_v4, %v692_v4  ;;  %1157 = vmatpush.bf16.msra.mxu3 %v1632_v27  ;;  %v720_v57 = vpack.c.bf16 %v1866_v23, %v1866_v23  ;;  %v1564_v20 = vor.u32 %v1701_v48, %v1563_v47  ;;  %v1555_v23 = vld [vmem:[%s2217_s3 + $0x50] sm:$0xf]  ;;  %v1605_v3 = vld [vmem:[%s2217_s3 + $0x118] sm:$0xf0]  ;;  %v1547_v6 = vld [vmem:[%s2217_s3 + $0x40] sm:$0xf] }
 0x145   : > { %v734_v17 = vunpack.c.l.b16 %v698_v11  ;;  %v735_v19 = vunpack.c.l.b16 %v699_v12  ;;  %v1568_v61 = vor.u32 %v1700_v49, %v1565_v50  ;;  %v1616_v0 = vor.u32 %v1724_v53, %v1613_v54  ;;  %v1697_v7 = vld [vmem:[%s2217_s3 + $0x44] sm:$0xf0]  ;;  %v1696_v8 = vld [vmem:[%s2217_s3 + $0x44] sm:$0xf]  ;;  %v1549_v9 = vld [vmem:[%s2217_s3 + $0x48] sm:$0xf0] }
 0x146   : > { %v736_v21 = vunpack.c.l.b16 %v700_v13  ;;  %v746_v22 = vrot.slane %v733_v10, 4  ;;  %1145 = vmatpush.bf16.msra.mxu2 %v1620_v34  ;;  %v1604_v1 = vor.u32 %v1723_v55, %v1603_v60  ;;  %v1556_v4 = vor.u32 %v1699_v59, %v1555_v23  ;;  %v1539_v13 = vld [vmem:[%s2217_s3 + $0x30] sm:$0xf]  ;;  %v1695_v14 = vld [vmem:[%s2217_s3 + $0x34] sm:$0xf0] }
 0x147   : > { %v749_v29 = vrot.slane %v734_v17, 3  ;;  %v752_v30 = vrot.slane %v735_v19, 2  ;;  %v1560_v5 = vor.u32 %v1698_v62, %v1557_v63  ;;  %v1608_v10 = vor.u32 %v1722_v2, %v1605_v3  ;;  %v1694_v15 = vld [vmem:[%s2217_s3 + $0x34] sm:$0xf]  ;;  %v1541_v18 = vld [vmem:[%s2217_s3 + $0x38] sm:$0xf0] }
 0x148   : > { %v748_v28 = vsel %vm747_vm5, %v746_v22, %v745_v26  ;;  %v755_v36 = vrot.slane %v736_v21, 1  ;;  %1158 = vmatpush.bf16.msra.mxu3 %v1624_v51  ;;  %v1548_v11 = vor.u32 %v1697_v7, %v1547_v6  ;;  %v1552_v12 = vor.u32 %v1696_v8, %v1549_v9  ;;  %v1531_v19 = vld [vmem:[%s2217_s3 + $0x20] sm:$0xf]  ;;  %v1693_v21 = vld [vmem:[%s2217_s3 + $0x24] sm:$0xf0] }
 0x149   : > { %v751_v35 = vsel %vm750_vm6, %v749_v29, %v748_v28  ;;  %v1540_v16 = vor.u32 %v1695_v14, %v1539_v13  ;;  %v1544_v17 = vor.u32 %v1694_v15, %v1541_v18  ;;  %v1692_v22 = vld [vmem:[%s2217_s3 + $0x24] sm:$0xf]  ;;  %v1533_v24 = vld [vmem:[%s2217_s3 + $0x28] sm:$0xf0]  ;;  %v1532_v25 = vor.u32 %v1693_v21, %v1531_v19  ;;  %v1523_v27 = vld [vmem:[%s2217_s3 + $0x10] sm:$0xf] }
 0x14a   : > { %v754_v39 = vsel %vm753_vm7, %v752_v30, %v751_v35  ;;  %1146 = vmatpush.bf16.msra.mxu2 %v1612_v52  ;;  %v1536_v26 = vor.u32 %v1692_v22, %v1533_v24  ;;  %v1691_v28 = vld [vmem:[%s2217_s3 + $0x14] sm:$0xf0]  ;;  %v1690_v29 = vld [vmem:[%s2217_s3 + $0x14] sm:$0xf]  ;;  %v1525_v30 = vld [vmem:[%s2217_s3 + $0x18] sm:$0xf0] }
 0x14b   : > { %v757_v43 = vsel %vm756_vm8, %v755_v36, %v754_v39  ;;  %v1524_v31 = vor.u32 %v1691_v28, %v1523_v27  ;;  %v1528_v32 = vor.u32 %v1690_v29, %v1525_v30  ;;  %v1515_v33 = vld [vmem:[%s2217_s3] sm:$0xf]  ;;  %v1689_v34 = vld [vmem:[%s2217_s3 + $0x4] sm:$0xf0]  ;;  %v1688_v35 = vld [vmem:[%s2217_s3 + $0x4] sm:$0xf] }
 0x14c   : > { %v758_v44 = vpack.c.b16 %v757_v43, %v757_v43  ;;  %1159 = vmatpush.bf16.msra.mxu3 %v1616_v0  ;;  %v1516_v36 = vor.u32 %v1689_v34, %v1515_v33  ;;  %v1517_v37 = vld [vmem:[%s2217_s3 + $0x8] sm:$0xf0]  ;;  %v1595_v38 = vld [vmem:[%s2217_s3 + $0x100] sm:$0xf]  ;;  %v1721_v39 = vld [vmem:[%s2217_s3 + $0x104] sm:$0xf0] }
 0x14d   : > { %v1520_v40 = vor.u32 %v1688_v35, %v1517_v37  ;;  %v1596_v41 = vor.u32 %v1721_v39, %v1595_v38  ;;  %v1720_v42 = vld [vmem:[%s2217_s3 + $0x104] sm:$0xf]  ;;  %v1597_v43 = vld [vmem:[%s2217_s3 + $0x108] sm:$0xf0] }
 0x14e   : > { %920 = vmatmul.bf16.vlgmr.msrb.gmra.mxu2 %v758_v44  ;;  %933 = vmatmul.bf16.vlgmr.msrb.gmra.mxu3 %v758_v44  ;;  %v765_v58 = vsel %vm763_vm9, %v758_v44, 0  ;;  %v1600_v44 = vor.u32 %v1720_v42, %v1597_v43 }
 0x14f   : > { %774 = vmatpush.bf16.msrb.mxu0 %v765_v58  ;;  %791 = vmatpush.bf16.msrb.mxu1 %v765_v58  ;;  %v1169_v58 = vld [vmem:[%s2218_s4] sm:$0x3] }
 0x150   : > { %1147 = vmatpush.bf16.msra.mxu2 %v1604_v1  ;;  %1160 = vmatpush.bf16.msra.mxu3 %v1608_v10 }
 0x152   : > { %1431 = vmatmul.msk.bf16.vlgmr.msrb.gmra.mxu0 %vm759_vm10, %v716_v56  ;;  %1432 = vmatmul.msk.bf16.vlgmr.msrb.gmra.mxu1 %vm759_vm10, %v720_v57 }
 0x153   : > { %1018 = vmatpush.bf16.msra.mxu0 %v1572_v45  ;;  %1031 = vmatpush.bf16.msra.mxu1 %v1576_v46 }
 0x154   : > { %1148 = vmatpush.bf16.msra.mxu2 %v1596_v41  ;;  %1161 = vmatpush.bf16.msra.mxu3 %v1600_v44 }
 0x157   : > { %1019 = vmatpush.bf16.msra.mxu0 %v1564_v20  ;;  %1032 = vmatpush.bf16.msra.mxu1 %v1568_v61  ;;  %v1171_v20 = vperm.slane %v1169_v58, 0  ;;  %v1172_v61 = vperm.slane %v1169_v58, 1 }
 0x15b   : > { %1020 = vmatpush.bf16.msra.mxu0 %v1556_v4  ;;  %1033 = vmatpush.bf16.msra.mxu1 %v1560_v5 }
 0x15f   : > { %1021 = vmatpush.bf16.msra.mxu0 %v1548_v11  ;;  %1034 = vmatpush.bf16.msra.mxu1 %v1552_v12 }
 0x163   : > { %1022 = vmatpush.bf16.msra.mxu0 %v1540_v16  ;;  %1035 = vmatpush.bf16.msra.mxu1 %v1544_v17 }
 0x167   : > { %1023 = vmatpush.bf16.msra.mxu0 %v1532_v25  ;;  %1036 = vmatpush.bf16.msra.mxu1 %v1536_v26 }
 0x16b   : > { %1024 = vmatpush.bf16.msra.mxu0 %v1524_v31  ;;  %1037 = vmatpush.bf16.msra.mxu1 %v1528_v32 }
 0x16f   : > { %1025 = vmatpush.bf16.msra.mxu0 %v1516_v36  ;;  %1038 = vmatpush.bf16.msra.mxu1 %v1520_v40 }
 0x1cf   : > { %v776_v45 = vpop.f32.mrf.mxu0  ;;  %v793_v46 = vpop.f32.mrf.mxu1 }
 0x1d0   : > { %v780_v47 = vpack.c.bf16 %v776_v45, %v776_v45  ;;  %v797_v48 = vpack.c.bf16 %v793_v46, %v793_v46 }
 0x1d1   : > { %v921_v49 = vpop.f32.mrf.mxu2  ;;  %v934_v50 = vpop.f32.mrf.mxu3 }
 0x1d2   : > { %1026 = vmatmul.bf16.vlgmr.msra.gmra.mxu0 %v780_v47  ;;  %1039 = vmatmul.bf16.vlgmr.msra.gmra.mxu1 %v780_v47 }
 0x1d3   : > { %1149 = vmatmul.bf16.vlgmr.msra.gmra.mxu2 %v797_v48  ;;  %1162 = vmatmul.bf16.vlgmr.msra.gmra.mxu3 %v797_v48 }
 0x1d7   : > { %v795_v51 = vpop.f32.mrf.mxu1  ;;  %v778_v52 = vpop.f32.mrf.mxu0 }
 0x1d9   : > { %v923_v53 = vpop.f32.mrf.mxu2  ;;  %v936_v54 = vpop.f32.mrf.mxu3 }
 0x24f   : > { %v1027_v56 = vpop.f32.mrf.mxu0  ;;  %v1040_v57 = vpop.f32.mrf.mxu1 }
 0x250   : > { %v1028_v60 = vadd.f32 %v1027_v56, %v921_v49  ;;  %v1041_v55 = vadd.f32 %v1040_v57, %v934_v50 }
 0x256   : > { %v1150_v23 = vpop.f32.mrf.mxu2  ;;  %v1163_v59 = vpop.f32.mrf.mxu3 }
 0x257   : > { %v1167_v62 = vadd.f32 %v1150_v23, %v1028_v60  ;;  %v1168_v63 = vadd.f32 %v1163_v59, %v1041_v55  ;;  %v1029_v0 = vpop.f32.mrf.mxu0  ;;  %v1042_v1 = vpop.f32.mrf.mxu1 }
 0x259   : > { %v1175_v2 = vadd.f32 %v1171_v20, %v1167_v62  ;;  %v1176_v3 = vadd.f32 %v1172_v61, %v1168_v63 }
 0x25b   : > { %v1178_v4 = vmax.f32 %v1176_v3, 0.0  ;;  %v1177_v5 = vmax.f32 %v1175_v2, 0.0 }
 0x25d   : > { %v1181_v6 = vrot.slane %v1178_v4, 6 }
 0x25e   : > { %v1152_v7 = vpop.f32.mrf.mxu2  ;;  %v1165_v8 = vpop.f32.mrf.mxu3 }
 0x25f   : > { %v1182_v9 = vsel %vm603_vm14, %v1177_v5, %v1181_v6  ;;  %v1183_v10 = vsel %vm605_vm15, %v1177_v5, %v1181_v6  ;;  %v1185_v11 = vsel %vm608_vm0, %v1177_v5, %v1181_v6  ;;  %v1187_v12 = vsel %vm611_vm1, %v1181_v6, %v1177_v5 }
 0x260   : > { %v1184_v13 = vrot.slane %v1183_v10, 2  ;;  %v1186_v14 = vrot.slane %v1185_v11, 4  ;;  %v1188_v15 = vrot.slane %v1187_v12, 6  ;;  %v1657_v18 = vrot.slane %v1182_v9, 9 }
 0x262   : > { %v1658_v16 = vrot.slane %v1184_v13, 9  ;;  %v1659_v17 = vrot.slane %v1186_v14, 9  ;;  %v1660_v19 = vrot.slane %v1188_v15, 9  ;;  %v1205_v21 = vmax.f32 %v1182_v9, %v1657_v18 }
 0x264   : > { %v1206_v22 = vmax.f32 %v1184_v13, %v1658_v16  ;;  %v1207_v24 = vmax.f32 %v1186_v14, %v1659_v17  ;;  %v1208_v25 = vmax.f32 %v1188_v15, %v1660_v19  ;;  %v1213_v26 = vrot.slane %v1205_v21, 2 }
 0x266   : > { %v1214_v27 = vrot.slane %v1206_v22, 2  ;;  %v1215_v28 = vrot.slane %v1207_v24, 2  ;;  %v1216_v29 = vrot.slane %v1208_v25, 2  ;;  %v1221_v30 = vmax.f32 %v1205_v21, %v1213_v26 }
 0x268   : > { %v1222_v31 = vmax.f32 %v1206_v22, %v1214_v27  ;;  %v1223_v32 = vmax.f32 %v1207_v24, %v1215_v28  ;;  %v1224_v33 = vmax.f32 %v1208_v25, %v1216_v29  ;;  %v1229_v34 = vperm.slane %v1221_v30, 0 }
 0x26a   : > { %v1230_v35 = vperm.slane %v1222_v31, 0  ;;  %v1231_v36 = vperm.slane %v1223_v32, 0  ;;  %v1232_v37 = vperm.slane %v1224_v33, 0 }
 0x26c   : > { %v1233_v38 = vsel %vm738_vm2, %v1230_v35, %v1229_v34 }
 0x26d   : > { %v1234_v39 = vsel %vm741_vm3, %v1231_v36, %v1233_v38 }
 0x26e   : > { %v1235_v40 = vsel %vm744_vm4, %v1232_v37, %v1234_v39 }
 0x26f   : > { %1237 = vst [vmem:[%s241_s24] sm:$0xf] %v1235_v40 }
 0x270 PF: > { %s16_s18 = sadd.s32 1, %s1798_s18  }
 0x271   : > { %p13_p8 = scmp.ge.s32.totalorder %s16_s18, 4  }
 0x273   :  { %15 = sbr.rel (!%p13_p8) target bundleno = 1 (0x1), region = 79 }
 0x278   :  { %1257 = vsyncpa [#allocation3], 1 }
 0x279   :  { %1259 = vsyncpa [#allocation3 + $0x1], 1 }

</bundles_post_ra>
